<compile_context>
chip_gen: v6e
topology: v6e:2x2x1
jax: 0.10.0
libtpu: 0.0.40
codegen_flags: <defaults>
</compile_context>

<pallas_src>
import functools

import jax
import jax.numpy as jnp
from jax import lax
from jax.experimental import pallas as pl
from jax.experimental.pallas import tpu as pltpu


def _round_up(x, m):
    return ((x + m - 1) // m) * m


def _choose_batch_tile(B, batch_tile, target_tiles=4):
    # Derive TB from B so padding waste stays small and (on v7x) there are >= 2..4 grid
    # steps to shard across the two TensorCores; per-step overhead (~0.35 us) is well
    # amortized once TB is in the 1-4K range.  VMEM budget: the (TB, 32) x block is
    # lane-padded to 128 wide, so double-buffered x + out tiles cost ~4 KiB/row ->
    # cap TB at 8192 rows (~32 MiB worst case) to stay inside the scoped-VMEM default
    # on every generation (v7x has only 64 MiB physical VMEM).
    cap = _round_up(max(8, min(batch_tile, 8192)), 8)
    tb = _round_up(max(1, pl.cdiv(B, target_tiles)), 8)
    return max(8, min(tb, cap))


def _secondary_capsule_kernel(x_ref, w_ref, o_ref, *, num_units, unit_size):
    # x_ref: VMEM (TB, C*I)   batch tile; x_ref[b, c*I + i] == x_in[b, i, c]
    # w_ref: VMEM (C*I, N*S)  flattened capsule weights (constant index map -> resident)
    # o_ref: VMEM (TB, N*S)   lane-dense output tile
    #
    # Routing coefficients c_ij are identically 1 (softmax over a size-1 dim), so
    # s_j = sum_c u_hat collapses into the single MXU contraction below.
    s_j = jnp.dot(x_ref[...], w_ref[...],
                  preferred_element_type=jnp.float32)           # (TB, N*S), f32 accum

    # Squash reduction over the num_units axis, broadcast back to every lane:
    #   mag_sq[b, n*S + s] = sum_{n'} s_j[b, n'*S + s]^2
    # implemented as a lane-rotate reduction tree on the XLU (no MXU, no resident G).
    y = s_j * s_j
    total = num_units * unit_size
    if num_units & (num_units - 1) == 0:                        # power-of-two tree
        mag_sq = y
        shift = unit_size
        while shift < total:
            mag_sq = mag_sq + pltpu.roll(mag_sq, shift, axis=1)
            shift *= 2
    else:                                                       # small-N fallback
        mag_sq = y
        for j in range(1, num_units):
            mag_sq = mag_sq + pltpu.roll(y, j * unit_size, axis=1)

    # squash: v = (mag_sq / (1 + mag_sq)) * s / sqrt(mag_sq)
    #           = s * sqrt(mag_sq) * reciprocal(1 + mag_sq)     (sqrt + vrcp on EUP slot)
    # Note: an exactly-zero row yields 0 here (torch would divide by zero -> NaN), so
    # zero-padded batch rows stay clean; they are sliced off by the wrapper anyway.
    scale = jnp.sqrt(mag_sq) * pl.reciprocal(1.0 + mag_sq, approx=True)
    o_ref[...] = (s_j * scale).astype(o_ref.dtype)


def secondary_capsule_forward(x, W, *, batch_tile=2048, out_dtype=jnp.float32):
    """x: (B, in_units, in_channels); W: (1, in_channels, num_units, unit_size, in_units)."""
    B, in_units, in_channels = x.shape
    _, C, N, S, I = W.shape
    assert C == in_channels and I == in_units
    K = C * I            # MXU contraction dim (32 for the demo shapes)
    NS = N * S           # lane-dense output width (128 for the demo shapes)

    # NOTE: the reference module's 3 dynamic-routing iterations are an algebraic no-op
    # (softmax over a size-1 dim -> c_ij == 1 every iteration), so the kernel computes
    # s_j = sum_c u_hat directly.

    # Layout plumbing (wrapper side): x -> (B, C*I) channel-major, W -> (C*I, N*S).
    x_flat = jnp.transpose(x, (0, 2, 1)).reshape(B, K).astype(jnp.float32)
    w_flat = jnp.transpose(W[0], (0, 3, 1, 2)).reshape(K, NS).astype(jnp.float32)

    TB = _choose_batch_tile(B, batch_tile)
    num_tiles = pl.cdiv(B, TB)
    B_pad = num_tiles * TB
    if B_pad != B:
        x_flat = jnp.pad(x_flat, ((0, B_pad - B), (0, 0)))      # padded rows sliced off

    out_itemsize = jnp.dtype(out_dtype).itemsize
    cost = pl.CostEstimate(
        flops=int(2 * B_pad * K * NS + 8 * B_pad * NS),
        transcendentals=int(2 * B_pad * NS),
        bytes_accessed=int(4 * (B_pad * K + K * NS) + out_itemsize * B_pad * NS),
    )

    kernel = functools.partial(_secondary_capsule_kernel, num_units=N, unit_size=S)
    out = pl.pallas_call(
        kernel,
        out_shape=jax.ShapeDtypeStruct((B_pad, NS), out_dtype),
        grid_spec=pltpu.PrefetchScalarGridSpec(
            num_scalar_prefetch=0,
            grid=(num_tiles,),
            in_specs=[
                pl.BlockSpec((TB, K), lambda b: (b, 0)),        # streamed batch tile
                pl.BlockSpec((K, NS), lambda b: (0, 0)),        # W resident across steps
            ],
            out_specs=pl.BlockSpec((TB, NS), lambda b: (b, 0)), # lane-dense output slab
        ),
        compiler_params=pltpu.CompilerParams(
            # batch tiles are independent -> shard grid steps across TensorCores on v7x
            dimension_semantics=("parallel",),
        ),
        cost_estimate=cost,
    )(x_flat, w_flat)

    # Drop batch padding, restore the PyTorch return shape (B, num_units, unit_size, 1).
    return out[:B].reshape(B, N, S)[..., None]


if __name__ == "__main__":
    # Shapes implied by the module's forward: x is (batch, in_units, in_channels).
    B, in_units, in_channels, num_units, unit_size = 2, 8, 4, 8, 16

    key = jax.random.PRNGKey(0)
    kx, kw = jax.random.split(key)
    x = jax.random.normal(kx, (B, in_units, in_channels), dtype=jnp.float32)
    # deterministic stand-in for torch.nn.Parameter(torch.randn(1, C, N, S, I))
    W = jax.random.normal(kw, (1, in_channels, num_units, unit_size, in_units),
                          dtype=jnp.float32)

    fwd = jax.jit(secondary_capsule_forward)
    out = jax.block_until_ready(fwd(x, W))
    assert out.shape == (B, num_units, unit_size, 1)

    # Pure-JAX reference of the same math as the PyTorch forward, computed at HIGHEST
    # matmul precision as ground truth.
    u_hat = jnp.einsum('cnsi,bic->bcns', W[0], x, precision=lax.Precision.HIGHEST)
    s_j = u_hat.sum(axis=1)                                     # (B, N, S)
    mag_sq = jnp.sum(s_j ** 2, axis=1, keepdims=True)           # (B, 1, S) (torch dim=2)
    ref = ((mag_sq / (1.0 + mag_sq)) * (s_j / jnp.sqrt(mag_sq)))[..., None]

    assert out.shape == ref.shape
    # Tolerance accounts for the kernel's DEFAULT-precision matmul (single bf16 operand
    # pass on the MXU, ~4e-3 relative) plus the approximate EUP reciprocal.
    assert jnp.allclose(out, ref, rtol=1e-2, atol=1e-2)
    print("KERNEL_OK")
</pallas_src>

<mosaic_0001>
module attributes {stable_mosaic.version = 11 : i64} {
  func.func @_secondary_capsule_kernel(%arg0: i32, %arg1: memref<8x32xf32, #tpu.memory_space<vmem>>, %arg2: memref<32x128xf32, #tpu.memory_space<vmem>>, %arg3: memref<8x128xf32, #tpu.memory_space<vmem>>) attributes {dimension_semantics = [#tpu.dimension_semantics<parallel>], iteration_bounds = array<i64: 1>, scalar_prefetch = 0 : i64, scratch_operands = 0 : i64, tpu.core_type = #tpu.core_type<tc>, window_params = [{transform_indices = @transform_0, window_bounds = array<i64: 8, 32>}, {pipeline_mode = #tpu.pipeline_mode<synchronous>, transform_indices = @transform_1, window_bounds = array<i64: 32, 128>}, {transform_indices = @transform_2, window_bounds = array<i64: 8, 128>}]} {
    %c0 = arith.constant 0 : index
    %c0_0 = arith.constant 0 : index
    %0 = vector.load %arg1[%c0, %c0_0] : memref<8x32xf32, #tpu.memory_space<vmem>>, vector<8x32xf32>
    %c0_1 = arith.constant 0 : index
    %c0_2 = arith.constant 0 : index
    %1 = vector.load %arg2[%c0_1, %c0_2] : memref<32x128xf32, #tpu.memory_space<vmem>>, vector<32x128xf32>
    %cst = arith.constant dense<0.000000e+00> : vector<8x128xf32>
    %2 = tpu.matmul %0, %1, %cst {dimension_numbers = #tpu.dot_dimension_numbers<[1], [0], [0], [1], [0, 0, 1, 1], [], []>} : vector<8x32xf32>, vector<32x128xf32>, vector<8x128xf32> -> vector<8x128xf32>
    %3 = arith.mulf %2, %2 : vector<8x128xf32>
    %c16_i32 = arith.constant 16 : i32
    %4 = tpu.dynamic_rotate %3 by %c16_i32 dim 1 : vector<8x128xf32>, i32 -> vector<8x128xf32>
    %5 = arith.addf %3, %4 : vector<8x128xf32>
    %c32_i32 = arith.constant 32 : i32
    %6 = tpu.dynamic_rotate %5 by %c32_i32 dim 1 : vector<8x128xf32>, i32 -> vector<8x128xf32>
    %7 = arith.addf %5, %6 : vector<8x128xf32>
    %c64_i32 = arith.constant 64 : i32
    %8 = tpu.dynamic_rotate %7 by %c64_i32 dim 1 : vector<8x128xf32>, i32 -> vector<8x128xf32>
    %9 = arith.addf %7, %8 : vector<8x128xf32>
    %10 = math.sqrt %9 : vector<8x128xf32>
    %cst_3 = arith.constant 1.000000e+00 : f32
    %11 = vector.broadcast %cst_3 : f32 to vector<8x128xf32>
    %12 = arith.addf %11, %9 : vector<8x128xf32>
    %13 = tpu.reciprocal %12 {approx = true} : vector<8x128xf32> -> vector<8x128xf32>
    %14 = arith.mulf %10, %13 : vector<8x128xf32>
    %15 = arith.mulf %2, %14 : vector<8x128xf32>
    %c0_4 = arith.constant 0 : index
    %c0_5 = arith.constant 0 : index
    %16 = vector.load %arg3[%c0_4, %c0_5] : memref<8x128xf32, #tpu.memory_space<vmem>>, vector<8x128xf32>
    tpu.vector_store %arg3[%c0_4, %c0_5], %15 {strides = array<i32>} : memref<8x128xf32, #tpu.memory_space<vmem>>, vector<8x128xf32>,
    return
  }
  func.func @transform_0(%arg0: i32) -> (i32, i32) {
    %c0_i32 = arith.constant 0 : i32
    %c0_i32_0 = arith.constant 0 : i32
    return %arg0, %c0_i32 : i32, i32
  }
  func.func @transform_1(%arg0: i32) -> (i32, i32) {
    %c0_i32 = arith.constant 0 : i32
    %c0_i32_0 = arith.constant 0 : i32
    %c0_i32_1 = arith.constant 0 : i32
    return %c0_i32, %c0_i32_0 : i32, i32
  }
  func.func @transform_2(%arg0: i32) -> (i32, i32) {
    %c0_i32 = arith.constant 0 : i32
    %c0_i32_0 = arith.constant 0 : i32
    return %arg0, %c0_i32 : i32, i32
  }
}

</mosaic_0001>

<bundles_post_ra>
// kernel: secondary_capsule_forward.1
= control target key start
LH: loop header
LB: loop body
LE: loop exit
PB: predicated region body
PF: predicated region fallthrough
CT: control target
= control target key end

     0   :  { %v142_v0 = vmov 0.0   ;;  %vm143_vm0 = vmmov 0   ;;  %vm16_vm1 = vcmask 261120   ;;  %s144_s19 = smov 16   ;;  %s145_s20 = smov 32   ;;  %s180_s1 = inlined_call_operand.vmem [shape: f32[32,128], index: 1, kind: input, shape index: {}]   ;;  %s181_s0 = inlined_call_operand.vmem [shape: f32[8,32], index: 0, kind: input, shape index: {}]   ;;  %s182_s2 = inlined_call_operand.vmem [shape: f32[8,128], index: 2, kind: output, shape index: {}]  }
   0x1   :  { %122 = vmatprep.subr.mxu0 %v142_v0  ;;  %v15_v1 = vld [vmem:[%s180_s1 + $0x18] sm:$0xff]  ;;  %v14_v2 = vld [vmem:[%s180_s1 + $0x10] sm:$0xff]  ;;  %130 = vmatprep.mubr.msk.f32.mxu0 %vm143_vm0, %v142_v0  ;;  %v13_v3 = vld [vmem:[%s180_s1 + $0x8] sm:$0xff] }
   0x2   :  { %123 = vmatpush3.msra.mxu0 %v15_v1  ;;  %v12_v4 = vld [vmem:[%s180_s1] sm:$0xff]  ;;  %s146_s1 = smov 64  }
   0x3   :  { %124 = vmatprep.subr.mxu0 %v142_v0  ;;  %v11_v5 = vld [vmem:[%s181_s0] sm:$0xff] }
   0x4   :  { %125 = vmatpush3.msra.mxu0 %v14_v2 }
   0x5   :  { %126 = vmatprep.subr.mxu0 %v142_v0 }
   0x6   :  { %127 = vmatpush3.msra.mxu0 %v13_v3 }
   0x7   :  { %128 = vmatprep.subr.mxu0 %v142_v0 }
   0x8   :  { %129 = vmatpush3.msra.mxu0 %v12_v4 }
   0x9   :  { %131 = vmatmul.mubr.msk.f32.vlgmr.msra.gmra.mxu0 %vm16_vm1, %v11_v5 }
  0xc9   :  { %v86_v6 = vpop.f32.mrf.mxu0 }
  0xca   :  { %v90_v7 = vmul.f32 %v86_v6, %v86_v6 }
  0xcb   :  { %v132_v8 = vpop.f32.mrf.mxu0 }
  0xcc   :  { %91 = vrot.lane.b32.xlu0 %v90_v7, %s144_s19 }
 0x13e   :  { %v92_v9 = vpop.permute.xlu0 %91 }
 0x13f   :  { %v93_v10 = vadd.f32 %v92_v9, %v90_v7 }
 0x141   :  { %94 = vrot.lane.b32.xlu0 %v93_v10, %s145_s20 }
 0x1b3   :  { %v95_v11 = vpop.permute.xlu0 %94 }
 0x1b4   :  { %v96_v12 = vadd.f32 %v95_v11, %v93_v10 }
 0x1b6   :  { %97 = vrot.lane.b32.xlu1 %v96_v12, %s146_s1 }
 0x228   :  { %v98_v13 = vpop.permute.xlu1 %97 }
 0x229   :  { %v99_v14 = vadd.f32 %v98_v13, %v96_v12 }
 0x22b   :  { %138 = vrsqrt.f32 %v99_v14  ;;  %v107_v15 = vadd.f32 1.0, %v99_v14  ;;  %vm102_vm2 = vcmp.eq.f32.partialorder %v99_v14, inf  ;;  %v105_v18 = vand.u32 2147483648, %v99_v14 }
 0x22c   :  { %vm104_vm3 = vcmp.eq.f32.partialorder %v99_v14, 0.0 }
 0x22d   :  { %140 = vrcp.f32 %v107_v15 }
 0x238   :  { %v139_v16 = vpop.eup %138 }
 0x239   :  { %v101_v17 = vmul.f32 %v139_v16, %v99_v14 }
 0x23a   :  { %v141_v20 = vpop.eup %140 }
 0x23b   :  { %v103_v19 = vsel %vm102_vm2, %v99_v14, %v101_v17 }
 0x23c   :  { %v106_v21 = vsel %vm104_vm3, %v105_v18, %v103_v19 }
 0x23d   :  { %v109_v22 = vmul.f32 %v141_v20, %v106_v21 }
 0x23f   :  { %v110_v23 = vmul.f32 %v109_v22, %v86_v6 }
 0x241   :  { %111 = vst [vmem:[%s182_s2] sm:$0xff] %v110_v23 }

</bundles_post_ra>
